<compile_context>
chip_gen: v5e
topology: v5e:2x2
jax: 0.10.0
libtpu: 0.0.40
codegen_flags: <defaults>
</compile_context>

<pallas_src>
import functools
import numpy as np
import jax
import jax.numpy as jnp
from jax import lax
from jax.experimental import pallas as pl
from jax.experimental.pallas import tpu as pltpu


def _round_up(x, m):
    return (x + m - 1) // m * m


@functools.lru_cache(maxsize=None)
def _make_rfft_basis(N, freq_tile, dtype_name):
    """Fused, tile-interleaved rfft basis of shape (N, 2 * Fpad).

    Per frequency tile fi of width `freq_tile`, columns are laid out as
    [ cos columns of tile fi | -sin columns of tile fi ], so one (N, 2*Tf)
    block feeds a single MXU matmul per grid step.  Every column k is
    pre-scaled by w_k / N (w=1 for k=0 and k=N/2, w=2 otherwise), folding both
    the conjugate-symmetry weighting of the real-input FFT and the 'forward'
    normalization into the matmul.  Padding columns are zero.
    """
    Fh = N // 2 + 1                       # rfft output length
    Fpad = _round_up(Fh, 128)
    assert Fpad % freq_tile == 0
    n = np.arange(N)
    k = np.arange(Fh)
    ang = 2.0 * np.pi * np.mod(np.outer(n, k), N) / N
    w = np.full(Fh, 2.0, dtype=np.float64)
    w[0] = 1.0
    if N % 2 == 0:
        w[-1] = 1.0
    scale = (w / N)[None, :]
    cos_w = np.cos(ang) * scale
    sin_w = -np.sin(ang) * scale
    pad = Fpad - Fh
    if pad:
        z = np.zeros((N, pad))
        cos_w = np.concatenate([cos_w, z], axis=1)
        sin_w = np.concatenate([sin_w, z], axis=1)
    nF = Fpad // freq_tile
    cos_w = cos_w.reshape(N, nF, freq_tile)
    sin_w = sin_w.reshape(N, nF, freq_tile)
    fused = np.concatenate([cos_w, sin_w], axis=2).reshape(N, nF * 2 * freq_tile)
    return jnp.asarray(fused, dtype=jnp.float32).astype(dtype_name)


def _fft_loss_kernel(pred_ref, targ_ref, basis_ref, out_ref,
                     d_ref, acc_ref, pear_ref,
                     *, l1_scale, pearson_scale):
    fi = pl.program_id(1)
    nf = pl.num_programs(1)

    # Once per batch tile: reset the wide accumulator, materialize the matmul
    # LHS d = pred - targ (cast once to the MXU dtype), and compute the
    # negative-Pearson term entirely in f32 (VPU/EUP).
    @pl.when(fi == 0)
    def _start_batch_tile():
        acc_ref[...] = jnp.zeros_like(acc_ref)
        p = pred_ref[...]                                   # (Bt, N) f32
        t = targ_ref[...]
        d_ref[...] = (p - t).astype(d_ref.dtype)
        inv_n = 1.0 / p.shape[-1]
        mp = jnp.sum(p, axis=-1, keepdims=True) * inv_n
        mt = jnp.sum(t, axis=-1, keepdims=True) * inv_n
        pc = p - mp
        tc = t - mt
        ss_p = jnp.sum(pc * pc, axis=-1, keepdims=True)
        ss_t = jnp.sum(tc * tc, axis=-1, keepdims=True)
        s_xy = jnp.sum(pc * tc, axis=-1, keepdims=True)
        # Algebraically equal to the normalize-then-correlate reference formula.
        # NOTE: a constant (zero-variance) row yields inf/NaN, same as torch.
        pearson = s_xy * lax.rsqrt(ss_p * ss_t)
        pear_ref[...] = jnp.sum(1.0 - pearson, keepdims=True) * pearson_scale

    # Every step: one fused (cos | -sin) rfft matmul on the MXU (f32 acc),
    # then magnitudes accumulated WIDE (pure VALU adds, no per-step XLU
    # reduction, no scalar read-modify-write on the critical path).
    prod = jnp.dot(d_ref[...], basis_ref[...],
                   preferred_element_type=jnp.float32)      # (Bt, 2*Tf)
    half = prod.shape[-1] // 2
    fr = prod[:, :half]
    fim = prod[:, half:]
    acc_ref[...] += jnp.sqrt(fr * fr + fim * fim)           # padded cols are 0

    # Once per batch tile: collapse to a scalar and emit the partial loss into
    # an aligned (8,128) output block (lane-dense, trivially tiled).
    @pl.when(fi == nf - 1)
    def _finalize_batch_tile():
        total = jnp.sum(acc_ref[...]) * l1_scale + jnp.sum(pear_ref[...])
        out_ref[...] = jnp.broadcast_to(total, out_ref.shape).astype(out_ref.dtype)


def _vmem_cap_bytes():
    """Generation-aware VMEM request cap (leave headroom for the compiler)."""
    try:
        phys = int(pltpu.get_tpu_info().vmem_capacity_bytes)
    except Exception:
        phys = 64 * 1024 * 1024            # conservative fallback
    if phys <= 64 * 1024 * 1024:           # v7x-class: 64 MiB physical per TC
        return 48 * 1024 * 1024
    return 96 * 1024 * 1024                # v5e / v6e: 128 MiB physical


def _footprint_bytes(bt, ft, N, mx_itemsize):
    io = 2 * 2 * bt * N * 4                      # pred+targ blocks, double-buffered
    basis = 2 * N * (2 * ft) * mx_itemsize       # basis block (assume 2 buffers)
    d_scr = bt * N * mx_itemsize                 # d scratch
    acc = bt * ft * 4 + 8 * 128 * 4              # wide accumulator + output block
    interm = 8 * bt * max(N, 2 * ft) * 4         # prod/mag/Pearson temporaries
    return io + basis + d_scr + acc + interm + (2 << 20)


def _choose_tiles(B, N, cap, mx_itemsize):
    """Pick (batch tile, freq tile); prefer a fully VMEM-resident basis."""
    Fpad = _round_up(N // 2 + 1, 128)
    Bpad = _round_up(max(B, 1), 8)
    bt_cands = []
    if Bpad <= 512:
        bt_cands.append(Bpad)                     # small batch: one grid step
    for bt in (256, 128, 64, 32, 16, 8):
        if bt < Bpad and bt not in bt_cands:
            bt_cands.append(bt)
    if not bt_cands:
        bt_cands = [Bpad]
    ft_cands = [Fpad] + [t for t in (512, 256, 128) if t < Fpad and Fpad % t == 0]
    for bt in bt_cands:
        for ft in ft_cands:
            if _footprint_bytes(bt, ft, N, mx_itemsize) <= cap:
                return bt, ft, Fpad
    return 8, ft_cands[-1], Fpad


def fft_loss(predictions, targets, *, basis_dtype=jnp.bfloat16,
             _force_bt=None, _force_ft=None):
    """Equivalent of fftLoss.forward for real-valued (B, N) signals."""
    assert predictions.shape == targets.shape and predictions.ndim == 2
    B, N = predictions.shape
    predictions = predictions.astype(jnp.float32)
    targets = targets.astype(jnp.float32)

    mx_dtype = jnp.dtype(basis_dtype)
    cap = _vmem_cap_bytes()
    Bt, ft, Fpad = _choose_tiles(B, N, cap, mx_dtype.itemsize)
    if _force_bt is not None:                     # testing hook
        Bt = int(_force_bt)
        assert Bt % 8 == 0
    if _force_ft is not None:                     # testing hook
        ft = int(_force_ft)
        assert Fpad % ft == 0 and ft % 128 == 0
    nF = Fpad // ft
    Bpad = _round_up(B, Bt)
    nB = Bpad // Bt

    if Bpad != B:
        # Pad with identical, non-constant ramp rows: Pearson(pad, pad) == 1
        # and FFT(pad - pad) == 0, so padded rows contribute exactly nothing.
        ramp = jnp.broadcast_to(jnp.arange(N, dtype=jnp.float32), (Bpad - B, N))
        predictions = jnp.concatenate([predictions, ramp], axis=0)
        targets = jnp.concatenate([targets, ramp], axis=0)

    basis = _make_rfft_basis(N, ft, mx_dtype.name)

    need = _footprint_bytes(Bt, ft, N, mx_dtype.itemsize)
    vmem_limit = int(min(cap, max(need + (4 << 20), 32 << 20)))

    kernel = functools.partial(
        _fft_loss_kernel,
        l1_scale=float(1.0 / (B * N)),            # scales use the ORIGINAL B
        pearson_scale=float(1.0 / B))

    partials = pl.pallas_call(
        kernel,
        out_shape=jax.ShapeDtypeStruct((nB, 8, 128), jnp.float32),
        grid_spec=pltpu.PrefetchScalarGridSpec(
            num_scalar_prefetch=0,
            grid=(nB, nF),
            in_specs=[
                pl.BlockSpec((Bt, N), lambda bi, fi: (bi, 0)),
                pl.BlockSpec((Bt, N), lambda bi, fi: (bi, 0)),
                pl.BlockSpec((N, 2 * ft), lambda bi, fi: (0, fi)),
            ],
            out_specs=pl.BlockSpec((1, 8, 128), lambda bi, fi: (bi, 0, 0)),
            scratch_shapes=[
                pltpu.VMEM((Bt, N), mx_dtype),       # d = pred - targ (MXU LHS)
                pltpu.VMEM((Bt, ft), jnp.float32),   # wide |FFT(d)| accumulator
                pltpu.VMEM((1, 1), jnp.float32),     # Pearson partial
            ],
        ),
        compiler_params=pltpu.CompilerParams(
            dimension_semantics=("parallel", "arbitrary"),
            vmem_limit_bytes=vmem_limit),
    )(predictions, targets, basis)

    # One partial per batch tile (block is a broadcast of the scalar).
    return jnp.sum(partials[:, 0, 0])


def _numpy_reference(p, t):
    p = np.asarray(p, dtype=np.float64)
    t = np.asarray(t, dtype=np.float64)
    mp = p.mean(-1, keepdims=True)
    mt = t.mean(-1, keepdims=True)
    pc, tc = p - mp, t - mt
    pear = (pc * tc).sum(-1) / np.sqrt((pc * pc).sum(-1) * (tc * tc).sum(-1))
    neg = np.mean(1.0 - pear)
    fd = (np.fft.fft(p, axis=1) - np.fft.fft(t, axis=1)) / p.shape[1]
    return neg + np.abs(fd).mean()


if __name__ == "__main__":
    key = jax.random.PRNGKey(0)
    k1, k2, k3, k4 = jax.random.split(key, 4)

    # Case 1: default bf16 MXU basis; B=12 exercises ramp batch-padding.
    B, N = 12, 128
    p = jax.random.normal(k1, (B, N), dtype=jnp.float32)
    t = jax.random.normal(k2, (B, N), dtype=jnp.float32)
    ref = _numpy_reference(p, t)
    loss_bf16 = fft_loss(p, t)
    jax.block_until_ready(loss_bf16)
    assert abs(float(loss_bf16) - ref) <= 2e-3 * max(1.0, abs(ref)), (float(loss_bf16), ref)

    # Case 2: f32 basis path, tight tolerance.
    loss_f32 = fft_loss(p, t, basis_dtype=jnp.float32)
    jax.block_until_ready(loss_f32)
    assert abs(float(loss_f32) - ref) <= 2e-4 * max(1.0, abs(ref)), (float(loss_f32), ref)

    # Case 3: forced multi-tile grid (nB=3, nF>1) to exercise per-batch-tile
    # partial outputs, wide accumulation across frequency steps, and padding.
    B2, N2 = 20, 768
    p2 = jax.random.normal(k3, (B2, N2), dtype=jnp.float32)
    t2 = jax.random.normal(k4, (B2, N2), dtype=jnp.float32)
    ref2 = _numpy_reference(p2, t2)
    loss_mt = fft_loss(p2, t2, _force_bt=8, _force_ft=128)
    jax.block_until_ready(loss_mt)
    assert abs(float(loss_mt) - ref2) <= 2e-3 * max(1.0, abs(ref2)), (float(loss_mt), ref2)

    print("KERNEL_OK")
</pallas_src>

<mosaic_0001>
module attributes {stable_mosaic.version = 11 : i64} {
  func.func @_fft_loss_kernel(%arg0: i32, %arg1: i32, %arg2: memref<16x128xf32, #tpu.memory_space<vmem>>, %arg3: memref<16x128xf32, #tpu.memory_space<vmem>>, %arg4: memref<128x256xbf16, #tpu.memory_space<vmem>>, %arg5: memref<1x8x128xf32, #tpu.memory_space<vmem>>, %arg6: memref<16x128xbf16, #tpu.memory_space<vmem>>, %arg7: memref<16x128xf32, #tpu.memory_space<vmem>>, %arg8: memref<1x1xf32, #tpu.memory_space<vmem>>) attributes {dimension_semantics = [#tpu.dimension_semantics<parallel>, #tpu.dimension_semantics<arbitrary>], iteration_bounds = array<i64: 1, 1>, scalar_prefetch = 0 : i64, scratch_operands = 3 : i64, tpu.core_type = #tpu.core_type<tc>, window_params = [{transform_indices = @transform_0, window_bounds = array<i64: 16, 128>}, {transform_indices = @transform_1, window_bounds = array<i64: 16, 128>}, {transform_indices = @transform_2, window_bounds = array<i64: 128, 256>}, {transform_indices = @transform_3, window_bounds = array<i64: 1, 8, 128>}]} {
    %c0_i32 = arith.constant 0 : i32
    %0 = arith.cmpi eq, %arg1, %c0_i32 : i32
    %1 = arith.extui %0 : i1 to i32
    %c0_i32_0 = arith.constant 0 : i32
    %2 = arith.cmpi ne, %1, %c0_i32_0 : i32
    scf.if %2 {
      %cst_10 = arith.constant 0.000000e+00 : f32
      %18 = vector.broadcast %cst_10 : f32 to vector<16x128xf32>
      %c0_11 = arith.constant 0 : index
      %c0_12 = arith.constant 0 : index
      %19 = vector.load %arg7[%c0_11, %c0_12] : memref<16x128xf32, #tpu.memory_space<vmem>>, vector<16x128xf32>
      tpu.vector_store %arg7[%c0_11, %c0_12], %18 {strides = array<i32>} : memref<16x128xf32, #tpu.memory_space<vmem>>, vector<16x128xf32>,
      %c0_13 = arith.constant 0 : index
      %c0_14 = arith.constant 0 : index
      %20 = vector.load %arg2[%c0_13, %c0_14] : memref<16x128xf32, #tpu.memory_space<vmem>>, vector<16x128xf32>
      %c0_15 = arith.constant 0 : index
      %c0_16 = arith.constant 0 : index
      %21 = vector.load %arg3[%c0_15, %c0_16] : memref<16x128xf32, #tpu.memory_space<vmem>>, vector<16x128xf32>
      %22 = arith.subf %20, %21 : vector<16x128xf32>
      %23 = arith.truncf %22 : vector<16x128xf32> to vector<16x128xbf16>
      %c0_17 = arith.constant 0 : index
      %c0_18 = arith.constant 0 : index
      %24 = vector.load %arg6[%c0_17, %c0_18] : memref<16x128xbf16, #tpu.memory_space<vmem>>, vector<16x128xbf16>
      tpu.vector_store %arg6[%c0_17, %c0_18], %23 {strides = array<i32>} : memref<16x128xbf16, #tpu.memory_space<vmem>>, vector<16x128xbf16>,
      %cst_19 = arith.constant dense<0.000000e+00> : vector<16xf32>
      %25 = vector.multi_reduction <add>, %20, %cst_19 [1] : vector<16x128xf32> to vector<16xf32>
      %26 = vector.shape_cast %25 : vector<16xf32> to vector<16x1xf32>
      %cst_20 = arith.constant 7.812500e-03 : f32
      %27 = vector.broadcast %cst_20 : f32 to vector<16x1xf32>
      %28 = arith.mulf %26, %27 : vector<16x1xf32>
      %cst_21 = arith.constant dense<0.000000e+00> : vector<16xf32>
      %29 = vector.multi_reduction <add>, %21, %cst_21 [1] : vector<16x128xf32> to vector<16xf32>
      %30 = vector.shape_cast %29 : vector<16xf32> to vector<16x1xf32>
      %cst_22 = arith.constant 7.812500e-03 : f32
      %31 = vector.broadcast %cst_22 : f32 to vector<16x1xf32>
      %32 = arith.mulf %30, %31 : vector<16x1xf32>
      %33 = vector.broadcast %28 : vector<16x1xf32> to vector<16x128xf32>
      %34 = arith.subf %20, %33 : vector<16x128xf32>
      %35 = vector.broadcast %32 : vector<16x1xf32> to vector<16x128xf32>
      %36 = arith.subf %21, %35 : vector<16x128xf32>
      %37 = arith.mulf %34, %34 : vector<16x128xf32>
      %cst_23 = arith.constant dense<0.000000e+00> : vector<16xf32>
      %38 = vector.multi_reduction <add>, %37, %cst_23 [1] : vector<16x128xf32> to vector<16xf32>
      %39 = vector.shape_cast %38 : vector<16xf32> to vector<16x1xf32>
      %40 = arith.mulf %36, %36 : vector<16x128xf32>
      %cst_24 = arith.constant dense<0.000000e+00> : vector<16xf32>
      %41 = vector.multi_reduction <add>, %40, %cst_24 [1] : vector<16x128xf32> to vector<16xf32>
      %42 = vector.shape_cast %41 : vector<16xf32> to vector<16x1xf32>
      %43 = arith.mulf %34, %36 : vector<16x128xf32>
      %cst_25 = arith.constant dense<0.000000e+00> : vector<16xf32>
      %44 = vector.multi_reduction <add>, %43, %cst_25 [1] : vector<16x128xf32> to vector<16xf32>
      %45 = vector.shape_cast %44 : vector<16xf32> to vector<16x1xf32>
      %46 = arith.mulf %39, %42 : vector<16x1xf32>
      %47 = math.rsqrt %46 : vector<16x1xf32>
      %48 = arith.mulf %45, %47 : vector<16x1xf32>
      %cst_26 = arith.constant 1.000000e+00 : f32
      %49 = vector.broadcast %cst_26 : f32 to vector<16x1xf32>
      %50 = arith.subf %49, %48 : vector<16x1xf32>
      %51 = vector.shape_cast %50 : vector<16x1xf32> to vector<1x16x1xf32>
      %cst_27 = arith.constant dense<0.000000e+00> : vector<1xf32>
      %52 = vector.multi_reduction <add>, %51, %cst_27 [1, 2] : vector<1x16x1xf32> to vector<1xf32>
      %53 = vector.shape_cast %52 : vector<1xf32> to vector<1x1x1xf32>
      %54 = vector.extract %53[0, 0, 0] : f32 from vector<1x1x1xf32>
      %55 = vector.broadcast %54 : f32 to vector<1x1xf32>
      %cst_28 = arith.constant 0.0833333358 : f32
      %56 = vector.broadcast %cst_28 : f32 to vector<1x1xf32>
      %57 = arith.mulf %55, %56 : vector<1x1xf32>
      %c0_29 = arith.constant 0 : index
      %c0_30 = arith.constant 0 : index
      %58 = vector.load %arg8[%c0_29, %c0_30] : memref<1x1xf32, #tpu.memory_space<vmem>>, vector<1x1xf32>
      tpu.vector_store %arg8[%c0_29, %c0_30], %57 {strides = array<i32>} : memref<1x1xf32, #tpu.memory_space<vmem>>, vector<1x1xf32>,
    } else {
    }
    %c0 = arith.constant 0 : index
    %c0_1 = arith.constant 0 : index
    %3 = vector.load %arg6[%c0, %c0_1] : memref<16x128xbf16, #tpu.memory_space<vmem>>, vector<16x128xbf16>
    %c0_2 = arith.constant 0 : index
    %c0_3 = arith.constant 0 : index
    %4 = vector.load %arg4[%c0_2, %c0_3] : memref<128x256xbf16, #tpu.memory_space<vmem>>, vector<128x256xbf16>
    %cst = arith.constant dense<0.000000e+00> : vector<16x256xf32>
    %5 = tpu.matmul %3, %4, %cst {dimension_numbers = #tpu.dot_dimension_numbers<[1], [0], [0], [1], [0, 0, 1, 1], [], []>} : vector<16x128xbf16>, vector<128x256xbf16>, vector<16x256xf32> -> vector<16x256xf32>
    %6 = vector.extract_strided_slice %5 {offsets = [0, 0], sizes = [16, 128], strides = [1, 1]} : vector<16x256xf32> to vector<16x128xf32>
    %7 = vector.extract_strided_slice %5 {offsets = [0, 128], sizes = [16, 128], strides = [1, 1]} : vector<16x256xf32> to vector<16x128xf32>
    %c0_4 = arith.constant 0 : index
    %c0_5 = arith.constant 0 : index
    %8 = vector.load %arg7[%c0_4, %c0_5] : memref<16x128xf32, #tpu.memory_space<vmem>>, vector<16x128xf32>
    %9 = arith.mulf %6, %6 : vector<16x128xf32>
    %10 = arith.mulf %7, %7 : vector<16x128xf32>
    %11 = arith.addf %9, %10 : vector<16x128xf32>
    %12 = math.sqrt %11 : vector<16x128xf32>
    %13 = arith.addf %8, %12 : vector<16x128xf32>
    %c0_6 = arith.constant 0 : index
    %c0_7 = arith.constant 0 : index
    %14 = vector.load %arg7[%c0_6, %c0_7] : memref<16x128xf32, #tpu.memory_space<vmem>>, vector<16x128xf32>
    tpu.vector_store %arg7[%c0_6, %c0_7], %13 {strides = array<i32>} : memref<16x128xf32, #tpu.memory_space<vmem>>, vector<16x128xf32>,
    %c0_i32_8 = arith.constant 0 : i32
    %15 = arith.cmpi eq, %arg1, %c0_i32_8 : i32
    %16 = arith.extui %15 : i1 to i32
    %c0_i32_9 = arith.constant 0 : i32
    %17 = arith.cmpi ne, %16, %c0_i32_9 : i32
    scf.if %17 {
      %c0_10 = arith.constant 0 : index
      %c0_11 = arith.constant 0 : index
      %18 = vector.load %arg7[%c0_10, %c0_11] : memref<16x128xf32, #tpu.memory_space<vmem>>, vector<16x128xf32>
      %19 = vector.shape_cast %18 : vector<16x128xf32> to vector<1x16x128xf32>
      %cst_12 = arith.constant dense<0.000000e+00> : vector<1xf32>
      %20 = vector.multi_reduction <add>, %19, %cst_12 [1, 2] : vector<1x16x128xf32> to vector<1xf32>
      %21 = vector.shape_cast %20 : vector<1xf32> to vector<1x1x1xf32>
      %22 = vector.extract %21[0, 0, 0] : f32 from vector<1x1x1xf32>
      %cst_13 = arith.constant 6.51041686E-4 : f32
      %23 = arith.mulf %22, %cst_13 : f32
      %c0_14 = arith.constant 0 : index
      %c0_15 = arith.constant 0 : index
      %24 = vector.load %arg8[%c0_14, %c0_15] : memref<1x1xf32, #tpu.memory_space<vmem>>, vector<1x1xf32>
      %25 = vector.shape_cast %24 : vector<1x1xf32> to vector<1x1x1xf32>
      %cst_16 = arith.constant dense<0.000000e+00> : vector<1xf32>
      %26 = vector.multi_reduction <add>, %25, %cst_16 [1, 2] : vector<1x1x1xf32> to vector<1xf32>
      %27 = vector.shape_cast %26 : vector<1xf32> to vector<1x1x1xf32>
      %28 = vector.extract %27[0, 0, 0] : f32 from vector<1x1x1xf32>
      %29 = arith.addf %23, %28 : f32
      %30 = vector.broadcast %29 : f32 to vector<1x8x128xf32>
      %c0_17 = arith.constant 0 : index
      %c0_18 = arith.constant 0 : index
      %c0_19 = arith.constant 0 : index
      %31 = vector.load %arg5[%c0_17, %c0_18, %c0_19] : memref<1x8x128xf32, #tpu.memory_space<vmem>>, vector<1x8x128xf32>
      tpu.vector_store %arg5[%c0_17, %c0_18, %c0_19], %30 {strides = array<i32>} : memref<1x8x128xf32, #tpu.memory_space<vmem>>, vector<1x8x128xf32>,
    } else {
    }
    return
  }
  func.func @transform_0(%arg0: i32, %arg1: i32) -> (i32, i32) {
    %c0_i32 = arith.constant 0 : i32
    %c0_i32_0 = arith.constant 0 : i32
    return %arg0, %c0_i32 : i32, i32
  }
  func.func @transform_1(%arg0: i32, %arg1: i32) -> (i32, i32) {
    %c0_i32 = arith.constant 0 : i32
    %c0_i32_0 = arith.constant 0 : i32
    return %arg0, %c0_i32 : i32, i32
  }
  func.func @transform_2(%arg0: i32, %arg1: i32) -> (i32, i32) {
    %c0_i32 = arith.constant 0 : i32
    %c0_i32_0 = arith.constant 0 : i32
    return %c0_i32, %arg1 : i32, i32
  }
  func.func @transform_3(%arg0: i32, %arg1: i32) -> (i32, i32, i32) {
    %c0_i32 = arith.constant 0 : i32
    %c0_i32_0 = arith.constant 0 : i32
    %c0_i32_1 = arith.constant 0 : i32
    return %arg0, %c0_i32, %c0_i32_0 : i32, i32, i32
  }
}

</mosaic_0001>

<bundles_post_ra>
// kernel: tpu_custom_call.1
= control target key start
LH: loop header
LB: loop body
LE: loop exit
PB: predicated region body
PF: predicated region fallthrough
CT: control target
= control target key end

     0   :  { %8 = vsyncpa [#allocation6], 0  ;;  %s633_s0 = inlined_call_operand.hbm [shape: f32[16,128], index: 0, kind: input, shape index: {}]   ;;  %s634_s1 = inlined_call_operand.hbm [shape: f32[16,128], index: 1, kind: input, shape index: {}]   ;;  %s635_s2 = inlined_call_operand.hbm [shape: bf16[128,256], index: 2, kind: input, shape index: {}]   ;;  %s636_s3 = inlined_call_operand.hbm [shape: f32[1,8,128], index: 3, kind: output, shape index: {}]  }
   0x1   :  { %9 = vsyncpa [#allocation9], 0 }
   0x2   :  { %10 = vsyncpa [#allocation7], 0  ;;  %s28_s14 = sshll.u32 %s634_s1, 4  ;;  %s575_s15 = smov [#allocation8]   ;;  %s29_s14 = int_to_ptr.hbm [resolvable:$true] %s28_s14 }
   0x3   :  { %s30_s16 = sshll.u32 %s575_s15, 4  ;;  %s15_s19 = sshll.u32 %s633_s0, 4  ;;  %s31_s16 = int_to_ptr.vmem [resolvable:$true] %s30_s16  ;;  %s16_s19 = int_to_ptr.hbm [resolvable:$true] %s15_s19 }
   0x4   :  { %s576_s20 = smov 128   ;;  %s577_s21 = smov 8  }
   0x5   :  { %36 = dma.hbm_to_vmem [thread:$0]  %s29_s14, 256, %s31_s16, [#allocation9], %s576_s20, %s576_s20, %s577_s21  }
   0x6   :  { %s578_s22 = smov [#allocation5]   ;;  %s41_s26 = sshll.u32 %s635_s2, 4  ;;  %s42_s26 = int_to_ptr.hbm [resolvable:$true] %s41_s26 }
   0x7   :  { %s17_s23 = sshll.u32 %s578_s22, 4  ;;  %s579_s1 = smov [#allocation10]   ;;  %s18_s23 = int_to_ptr.vmem [resolvable:$true] %s17_s23 }
   0x8   :  { %23 = dma.hbm_to_vmem [thread:$0]  %s16_s19, 256, %s18_s23, [#allocation6], %s576_s20, %s576_s20, %s577_s21  }
   0x9   :  { %s43_s27 = sshll.u32 %s579_s1, 4  ;;  %s44_s27 = int_to_ptr.vmem [resolvable:$true] %s43_s27 }
   0xa   :  { %49 = dma.hbm_to_vmem [thread:$0]  %s42_s26, 2048, %s44_s27, [#allocation9], %s576_s20, %s576_s20, %s577_s21  }
   0xb   :  { %569 = dma.done.wait [#allocation6], 256  }
   0xc   :  { %570 = vsyncadd [#allocation6], 4294967040 }
   0xd   :  { %571 = dma.done.wait [#allocation9], 2304  }
   0xe   :  { %572 = vsyncadd [#allocation9], 4294964992  ;;  %v610_v0 = vld [vmem:[#allocation8] sm:$0xff]  ;;  %v612_v1 = vld [vmem:[#allocation5] sm:$0xff]  ;;  %vm138_vm10 = vcmask 7168   ;;  %vm153_vm11 = vcmask 0  }
   0xf   :  { %v614_v2 = vld [vmem:[#allocation8 + $0x8] sm:$0xff]  ;;  %84 = vadd.xlane.f32.xlu1 %v610_v0  ;;  %78 = vadd.xlane.f32.xlu0 %v612_v1  ;;  %v72_v3 = vsub.f32 %v612_v1, %v610_v0  ;;  %v620_v4 = vld [vmem:[#allocation5 + $0x8] sm:$0xff]  ;;  %v425_v5 = vld [vmem:[#allocation10 + $0x70] sm:$0xf]  ;;  %s580_s28 = smov [#allocation11]   ;;  %s352_s6 = sshll.u32 %s636_s3, 4  ;;  %s353_s6 = int_to_ptr.hbm [resolvable:$true] %s352_s6 }
  0x10   :  { %v447_v6 = vld [vmem:[#allocation10 + $0x74] sm:$0xf0]  ;;  %v73_v7 = vsub.f32 %v620_v4, %v614_v2  ;;  %v446_v9 = vld [vmem:[#allocation10 + $0x74] sm:$0xf]  ;;  %v427_v10 = vld [vmem:[#allocation10 + $0x78] sm:$0xf0] }
  0x11   :  { %v426_v8 = vor.u32 %v447_v6, %v425_v5  ;;  %v417_v11 = vld [vmem:[#allocation10 + $0x60] sm:$0xf]  ;;  %v430_v12 = vor.u32 %v446_v9, %v427_v10  ;;  %v445_v13 = vld [vmem:[#allocation10 + $0x64] sm:$0xf0]  ;;  %v444_v14 = vld [vmem:[#allocation10 + $0x64] sm:$0xf] }
  0x12   :  { %v419_v15 = vld [vmem:[#allocation10 + $0x68] sm:$0xf0]  ;;  %v451_v16 = vpack.c.bf16 %v73_v7, %v72_v3  ;;  %v418_v17 = vor.u32 %v445_v13, %v417_v11  ;;  %v409_v18 = vld [vmem:[#allocation10 + $0x50] sm:$0xf]  ;;  %v443_v19 = vld [vmem:[#allocation10 + $0x54] sm:$0xf0] }
  0x13   :  { %259 = vmatpush.bf16.msra.mxu0 %v426_v8  ;;  %273 = vmatpush.bf16.msra.mxu1 %v430_v12  ;;  %v422_v20 = vor.u32 %v444_v14, %v419_v15  ;;  %v442_v21 = vld [vmem:[#allocation10 + $0x54] sm:$0xf]  ;;  %v411_v22 = vld [vmem:[#allocation10 + $0x58] sm:$0xf0]  ;;  %v410_v23 = vor.u32 %v443_v19, %v409_v18  ;;  %v401_v25 = vld [vmem:[#allocation10 + $0x40] sm:$0xf] }
  0x14   :  { %452 = vst [vmem:[#allocation2] sm:$0xff] %v451_v16   ;;  %v414_v24 = vor.u32 %v442_v21, %v411_v22  ;;  %v441_v26 = vld [vmem:[#allocation10 + $0x44] sm:$0xf0]  ;;  %v440_v27 = vld [vmem:[#allocation10 + $0x44] sm:$0xf]  ;;  %s350_s29 = sshll.u32 %s580_s28, 4  ;;  %s351_s29 = int_to_ptr.vmem [resolvable:$true] %s350_s29 }
  0x15   :  { %v402_v28 = vor.u32 %v441_v26, %v401_v25  ;;  %v403_v29 = vld [vmem:[#allocation10 + $0x48] sm:$0xf0]  ;;  %v393_v31 = vld [vmem:[#allocation10 + $0x30] sm:$0xf]  ;;  %v439_v32 = vld [vmem:[#allocation10 + $0x34] sm:$0xf0] }
  0x16   :  { %v406_v30 = vor.u32 %v440_v27, %v403_v29  ;;  %v438_v33 = vld [vmem:[#allocation10 + $0x34] sm:$0xf]  ;;  %v394_v34 = vor.u32 %v439_v32, %v393_v31  ;;  %v395_v35 = vld [vmem:[#allocation10 + $0x38] sm:$0xf0]  ;;  %v385_v37 = vld [vmem:[#allocation10 + $0x20] sm:$0xf] }
  0x17   :  { %260 = vmatpush.bf16.msra.mxu0 %v418_v17  ;;  %86 = vadd.xlane.f32.xlu1 %v614_v2  ;;  %v398_v36 = vor.u32 %v438_v33, %v395_v35  ;;  %v437_v38 = vld [vmem:[#allocation10 + $0x24] sm:$0xf0]  ;;  %v436_v39 = vld [vmem:[#allocation10 + $0x24] sm:$0xf]  ;;  %v387_v41 = vld [vmem:[#allocation10 + $0x28] sm:$0xf0] }
  0x18   :  { %80 = vadd.xlane.f32.xlu0 %v620_v4  ;;  %274 = vmatpush.bf16.msra.mxu1 %v422_v20  ;;  %v386_v40 = vor.u32 %v437_v38, %v385_v37  ;;  %v390_v42 = vor.u32 %v436_v39, %v387_v41  ;;  %v377_v43 = vld [vmem:[#allocation10 + $0x10] sm:$0xf]  ;;  %v435_v44 = vld [vmem:[#allocation10 + $0x14] sm:$0xf0]  ;;  %v434_v45 = vld [vmem:[#allocation10 + $0x14] sm:$0xf] }
  0x19   :  { %v378_v46 = vor.u32 %v435_v44, %v377_v43  ;;  %v379_v47 = vld [vmem:[#allocation10 + $0x18] sm:$0xf0]  ;;  %v369_v49 = vld [vmem:[#allocation10] sm:$0xf]  ;;  %v433_v50 = vld [vmem:[#allocation10 + $0x4] sm:$0xf0] }
  0x1a   :  { %v382_v48 = vor.u32 %v434_v45, %v379_v47  ;;  %v432_v51 = vld [vmem:[#allocation10 + $0x4] sm:$0xf]  ;;  %v370_v52 = vor.u32 %v433_v50, %v369_v49  ;;  %v371_v53 = vld [vmem:[#allocation10 + $0x8] sm:$0xf0] }
  0x1b   :  { %261 = vmatpush.bf16.msra.mxu0 %v410_v23  ;;  %v374_v54 = vor.u32 %v432_v51, %v371_v53  ;;  %v431_v55 = vld [vmem:[#allocation2] sm:$0xff] }
  0x1c   :  { %275 = vmatpush.bf16.msra.mxu1 %v414_v24 }
  0x1f   :  { %262 = vmatpush.bf16.msra.mxu0 %v402_v28 }
  0x20   :  { %276 = vmatpush.bf16.msra.mxu1 %v406_v30 }
  0x23   :  { %263 = vmatpush.bf16.msra.mxu0 %v394_v34 }
  0x24   :  { %277 = vmatpush.bf16.msra.mxu1 %v398_v36 }
  0x27   :  { %264 = vmatpush.bf16.msra.mxu0 %v386_v40 }
  0x28   :  { %278 = vmatpush.bf16.msra.mxu1 %v390_v42 }
  0x2b   :  { %265 = vmatpush.bf16.msra.mxu0 %v378_v46 }
  0x2c   :  { %279 = vmatpush.bf16.msra.mxu1 %v382_v48 }
  0x2f   :  { %266 = vmatpush.bf16.msra.mxu0 %v370_v52 }
  0x30   :  { %280 = vmatpush.bf16.msra.mxu1 %v374_v54 }
  0x32   :  { %267 = vmatmul.bf16.vlgmr.msra.gmra.mxu0 %v431_v55 }
  0x33   :  { %281 = vmatmul.bf16.vlgmr.msra.gmra.mxu1 %v431_v55 }
  0x82   :  { %v85_v56 = vpop.xlane.xlu1 %84  ;;  %v79_v57 = vpop.xlane.xlu0 %78 }
  0x83   :  { %v88_v58 = vmul.f32 0.0078125, %v85_v56  ;;  %v82_v59 = vmul.f32 0.0078125, %v79_v57 }
  0x85   :  { %v92_v60 = vsub.f32 %v610_v0, %v88_v58  ;;  %v90_v61 = vsub.f32 %v612_v1, %v82_v59 }
  0x87   :  { %v100_v62 = vmul.f32 %v92_v60, %v92_v60  ;;  %v94_v63 = vmul.f32 %v90_v61, %v90_v61  ;;  %v106_v0 = vmul.f32 %v92_v60, %v90_v61 }
  0x89   :  { %102 = vadd.xlane.f32.xlu0 %v100_v62  ;;  %96 = vadd.xlane.f32.xlu2 %v94_v63 }
  0x8a   :  { %v87_v3 = vpop.xlane.xlu1 %86 }
  0x8b   :  { %v81_v5 = vpop.xlane.xlu0 %80  ;;  %v89_v6 = vmul.f32 0.0078125, %v87_v3 }
  0x8c   :  { %v83_v7 = vmul.f32 0.0078125, %v81_v5 }
  0x8d   :  { %v93_v8 = vsub.f32 %v614_v2, %v89_v6 }
  0x8e   :  { %v91_v9 = vsub.f32 %v620_v4, %v83_v7 }
  0x8f   :  { %v101_v10 = vmul.f32 %v93_v8, %v93_v8 }
  0x90   :  { %v107_v11 = vmul.f32 %v93_v8, %v91_v9  ;;  %v95_v12 = vmul.f32 %v91_v9, %v91_v9 }
  0x91   :  { %104 = vadd.xlane.f32.xlu1 %v101_v10 }
  0x92   :  { %110 = vadd.xlane.f32.xlu0 %v107_v11  ;;  %98 = vadd.xlane.f32.xlu2 %v95_v12 }
  0x9a   :  { %108 = vadd.xlane.f32.xlu2 %v106_v0 }
  0xaf   :  { %v268_v1 = vpop.f32.mrf.mxu0 }
  0xb0   :  { %v282_v13 = vpop.f32.mrf.mxu1  ;;  %v289_v16 = vmul.f32 %v268_v1, %v268_v1 }
  0xb1   :  { %v291_v17 = vmul.f32 %v282_v13, %v282_v13 }
  0xb3   :  { %v293_v19 = vadd.f32 %v291_v17, %v289_v16 }
  0xb5   :  { %vm302_vm2 = vcmp.eq.f32.partialorder %v293_v19, inf  ;;  %v305_v49 = vand.u32 2147483648, %v293_v19  ;;  %vm304_vm4 = vcmp.eq.f32.partialorder %v293_v19, 0.0 }
  0xb7   :  { %v270_v2 = vpop.f32.mrf.mxu0 }
  0xb8   :  { %v290_v20 = vmul.f32 %v270_v2, %v270_v2  ;;  %v284_v4 = vpop.f32.mrf.mxu1 }
  0xb9   :  { %v292_v21 = vmul.f32 %v284_v4, %v284_v4 }
  0xbb   :  { %v294_v22 = vadd.f32 %v292_v21, %v290_v20 }
  0xbd   :  { %vm314_vm6 = vcmp.eq.f32.partialorder %v294_v22, inf  ;;  %v317_v54 = vand.u32 2147483648, %v294_v22  ;;  %vm316_vm7 = vcmp.eq.f32.partialorder %v294_v22, 0.0 }
  0xfc   :  { %v97_v14 = vpop.xlane.xlu2 %96  ;;  %v103_v15 = vpop.xlane.xlu0 %102 }
  0xfd   :  { %v112_v18 = vmul.f32 %v103_v15, %v97_v14 }
  0xff   :  { %465 = vrsqrt.f32 %v112_v18  ;;  %vm120_vm1 = vweird.f32 %v112_v18 }
 0x100   :  { %467 = vrsqrt.f32 %v293_v19 }
 0x101   :  { %469 = vrsqrt.f32 %v294_v22 }
 0x104   :  { %v105_v23 = vpop.xlane.xlu1 %104 }
 0x105   :  { %v466_v24 = vpop.eup %465  ;;  %v99_v25 = vpop.xlane.xlu2 %98 }
 0x106   :  { %v115_v26 = vmul.f32 %v466_v24, %v112_v18  ;;  %v113_v27 = vmul.f32 %v105_v23, %v99_v25  ;;  %v468_v28 = vpop.eup %467  ;;  %vm121_vm0 = vweird.f32 %v466_v24  ;;  %v111_v61 = vpop.xlane.xlu0 %110 }
 0x107   :  { %v296_v30 = vmul.f32 %v468_v28, %v293_v19  ;;  %v470_v33 = vpop.eup %469  ;;  %vm122_vm3 = vmor %vm120_vm1, %vm121_vm0 }
 0x108   :  { %v116_v29 = vmul.f32 %v466_v24, %v115_v26  ;;  %471 = vrsqrt.f32 %v113_v27  ;;  %v308_v36 = vmul.f32 %v470_v33, %v294_v22  ;;  %vm130_vm8 = vweird.f32 %v113_v27 }
 0x109   :  { %v297_v32 = vmul.f32 %v468_v28, %v296_v30 }
 0x10a   :  { %v117_v31 = vmul.f32 0.5, %v116_v29  ;;  %v309_v39 = vmul.f32 %v470_v33, %v308_v36 }
 0x10b   :  { %v298_v35 = vmul.f32 0.5, %v297_v32 }
 0x10c   :  { %v118_v34 = vsub.f32 1.5, %v117_v31  ;;  %v310_v43 = vmul.f32 0.5, %v309_v39 }
 0x10d   :  { %v299_v38 = vsub.f32 1.5, %v298_v35  ;;  %v109_v53 = vpop.xlane.xlu2 %108 }
 0x10e   :  { %v472_v37 = vpop.eup %471  ;;  %v119_v41 = vmul.f32 %v466_v24, %v118_v34  ;;  %v311_v46 = vsub.f32 1.5, %v310_v43 }
 0x10f   :  { %v125_v40 = vmul.f32 %v472_v37, %v113_v27  ;;  %v300_v42 = vmul.f32 %v468_v28, %v299_v38  ;;  %vm131_vm5 = vweird.f32 %v472_v37 }
 0x110   :  { %v123_v48 = vsel %vm122_vm3, %v466_v24, %v119_v41  ;;  %v312_v51 = vmul.f32 %v470_v33, %v311_v46  ;;  %vm132_vm9 = vmor %vm130_vm8, %vm131_vm5 }
 0x111   :  { %v126_v44 = vmul.f32 %v472_v37, %v125_v40  ;;  %v301_v45 = vmul.f32 %v300_v42, %v293_v19  ;;  %v134_v55 = vmul.f32 %v123_v48, %v109_v53 }
 0x112   :  { %v313_v56 = vmul.f32 %v312_v51, %v294_v22 }
 0x113   :  { %v127_v47 = vmul.f32 0.5, %v126_v44  ;;  %v303_v50 = vsel %vm302_vm2, %v293_v19, %v301_v45  ;;  %v136_v3 = vsub.f32 1.0, %v134_v55 }
 0x114   :  { %v306_v58 = vsel %vm304_vm4, %v305_v49, %v303_v50  ;;  %v315_v59 = vsel %vm314_vm6, %v294_v22, %v313_v56 }
 0x115   :  { %v128_v52 = vsub.f32 1.5, %v127_v47  ;;  %v318_v62 = vsel %vm316_vm7, %v317_v54, %v315_v59  ;;  %v139_v7 = vsel %vm138_vm10, %v136_v3, 0.0 }
 0x116   :  { %v328_v5 = vadd.f32 %v318_v62, %v306_v58 }
 0x117   :  { %v129_v57 = vmul.f32 %v472_v37, %v128_v52 }
 0x118   :  { %329 = vadd.xlane.f32.xlu2 %v328_v5 }
 0x119   :  { %v133_v60 = vsel %vm132_vm9, %v472_v37, %v129_v57 }
 0x11a   :  { %v135_v63 = vmul.f32 %v133_v60, %v111_v61 }
 0x11c   :  { %v137_v6 = vsub.f32 1.0, %v135_v63 }
 0x11e   :  { %v140_v8 = vsel %vm138_vm10, %v137_v6, 0.0 }
 0x11f   :  { %v141_v9 = vadd.f32 %v140_v8, %v139_v7 }
 0x121   :  { %142 = vadd.xlane.f32.xlu1 %v141_v9 }
 0x18b   :  { %v330_v10 = vpop.xlane.xlu2 %329 }
 0x18c   :  { %v331_v11 = vrot.slane %v330_v10, 4 }
 0x18e   :  { %v332_v12 = vadd.f32 %v331_v11, %v330_v10 }
 0x190   :  { %v333_v1 = vrot.slane %v332_v12, 2 }
 0x192   :  { %v334_v14 = vadd.f32 %v333_v1, %v332_v12 }
 0x194   :  { %v143_v0 = vpop.xlane.xlu1 %142  ;;  %v335_v17 = vrot.slane %v334_v14, 1 }
 0x195   :  { %v144_v13 = vrot.slane %v143_v0, 4 }
 0x196   :  { %v336_v2 = vadd.f32 %v335_v17, %v334_v14 }
 0x197   :  { %v145_v15 = vadd.f32 %v144_v13, %v143_v0 }
 0x199   :  { %v146_v16 = vrot.slane %v145_v15, 2 }
 0x19b   :  { %v147_v18 = vadd.f32 %v146_v16, %v145_v15 }
 0x19d   :  { %v148_v19 = vrot.slane %v147_v18, 1 }
 0x19f   :  { %v149_v20 = vadd.f32 %v148_v19, %v147_v18 }
 0x1a1   :  { %453 = vpush %v149_v20 }
 0x1a2   :  { %455 = vpush %v336_v2 }
 0x1d2   :  { %s454_s0 = spop %453 }
 0x1d3   :  { %v151_v4 = vstv %s454_s0  ;;  %s456_s2 = spop %455 }
 0x1d4   :  { %v152_v21 = vmul.f32 0.083333336, %v151_v4  ;;  %s338_s30 = smul.f32 0.0006510417, %s456_s2 }
 0x1d6   :  { %154 = vst.msk [vmem:[#allocation4] sm:$0x1] %vm153_vm11, %v152_v21 }
 0x1dd   :  { %v339_v22 = vld [vmem:[#allocation4] sm:$0x1] }
 0x1de   :  { %457 = vpush %v339_v22 }
 0x20f   :  { %s458_s7 = spop %457 }
 0x210   :  { %s342_s8 = sadd.f32 %s458_s7, %s338_s30 }
 0x212   :  { %v343_v23 = vstv %s342_s8 }
 0x213   :  { %344 = vst [vmem:[#allocation11] sm:$0xff] %v343_v23 }
 0x214   :  { %355 = dma.vmem_to_hbm [thread:$0]  %s351_s29, 128, %s353_s6, [#allocation7]  }
 0x215   :  { %573 = dma.done.wait [#allocation7], 128  }
 0x216   :  { %574 = vsyncadd [#allocation7], 4294967168 }
 0x217   :  { %360 = vsyncpa [#allocation6], 1 }
 0x218   :  { %361 = vsyncpa [#allocation9], 1 }
 0x219   :  { %362 = vsyncpa [#allocation7], 1 }

</bundles_post_ra>
